<compile_context>
chip_gen: v5e
topology: v5e:2x2
jax: 0.10.0
libtpu: 0.0.40
codegen_flags: <defaults>
</compile_context>

<pallas_src>
import functools

import jax
import jax.numpy as jnp
from jax.experimental import pallas as pl
from jax.experimental.pallas import tpu as pltpu


def attention_kernel(hidden_ref, question_ref, wrh_ref, wrq_ref, br_ref,
                     eo_ref, wct_ref, bc_ref, out_ref, attn_ref,
                     *, h2, compute_dtype, approx_recip):
    # TODO(synk): nn.Dropout is treated as eval-mode identity (no RNG mask).
    l = pl.program_id(0)
    n_l = pl.num_programs(0)

    @pl.when(l == 0)
    def _init():
        # attention_reduced: cat([hidden, question]) @ W_red^T + b_red,
        # expressed as two accumulating dots on pre-split weight K-slices
        # (no per-call wrapper concatenate).
        h = hidden_ref[...].astype(compute_dtype)
        q = question_ref[...].astype(compute_dtype)
        red = jax.lax.dot_general(
            h, wrh_ref[...], (((1,), (1,)), ((), ())),
            preferred_element_type=jnp.float32)
        red = red + jax.lax.dot_general(
            q, wrq_ref[...], (((1,), (1,)), ((), ())),
            preferred_element_type=jnp.float32)
        red = red + br_ref[...]                                   # (B, Hp)

        # F.softmax(..., dim=1) on the (1, B, 2H) tensor == softmax over the
        # BATCH axis.  Statistics stay f32.
        m = jnp.max(red, axis=0, keepdims=True)
        e = jnp.exp(red - m)
        denom = jnp.sum(e, axis=0, keepdims=True)
        attn_ref[...] = e * pl.reciprocal(denom, approx=approx_recip)

        out_ref[...] = jnp.zeros_like(out_ref)

    # bmm(encoder_outputs, attn^T): contract over the real 2H feature lanes
    # only.  Padded attn lanes hold softmax(0) = 1/B and must never touch
    # encoder data (encoder_outputs is deliberately NOT padded).
    attn = attn_ref[...][:, :h2]                                  # (B, 2H)
    applied = jnp.sum(eo_ref[...] * attn[:, None, :], axis=-1)    # (B, tL)
    # TODO(synk): for very large L*2H this VPU-mult + lane-reduce becomes
    # XLU-bound; reformulate as a batched MXU dot_general at that point.

    # attention_combined, accumulated over L tiles (W_comb pre-transposed at
    # init to (L, Hp) so only its leading dim is tiled).
    out_ref[...] += jax.lax.dot_general(
        applied.astype(compute_dtype), wct_ref[...],
        (((1,), (0,)), ((), ())), preferred_element_type=jnp.float32)

    @pl.when(l == n_l - 1)
    def _finalize():
        out_ref[...] = jnp.maximum(out_ref[...] + bc_ref[...], 0.0)


def prepare_attention_params(w_reduced, b_reduced, w_combined, b_combined,
                             matmul_dtype=jnp.float32):
    """One-time parameter preparation (call at init, NOT per forward call).

    Pads the 2H output-feature axis up to a lane multiple (no-op when 2H is
    already a multiple of 128), splits W_red into its hidden / question
    K-slices, pre-transposes W_comb, and optionally casts the matmul operands
    to bf16 for the MXU fast path.
    """
    H2 = w_reduced.shape[0]                       # 2 * hidden_size
    Hp = ((H2 + 127) // 128) * 128
    pad = Hp - H2
    if pad:
        w_red = jnp.pad(w_reduced, ((0, pad), (0, 0)))
        b_red = jnp.pad(b_reduced, ((0, pad),))
        w_comb = jnp.pad(w_combined, ((0, pad), (0, 0)))
        b_comb = jnp.pad(b_combined, ((0, pad),))
    else:
        w_red, b_red, w_comb, b_comb = (w_reduced, b_reduced,
                                        w_combined, b_combined)
    return dict(
        w_red_h=w_red[:, :H2].astype(matmul_dtype),            # (Hp, 2H)
        w_red_q=w_red[:, H2:].astype(matmul_dtype),             # (Hp, H)
        b_red=b_red.reshape(1, Hp).astype(jnp.float32),         # (1, Hp)
        w_comb_t=jnp.transpose(w_comb).astype(matmul_dtype),    # (L, Hp)
        b_comb=b_comb.reshape(1, Hp).astype(jnp.float32),       # (1, Hp)
    )


def _pick_l_tile(L, target=512):
    """Largest L tile <= target that is a multiple of 8 and divides L."""
    if L <= target:
        return L
    for t in range(target, 7, -1):
        if t % 8 == 0 and L % t == 0:
            return t
    return L


@functools.partial(jax.jit, static_argnames=("approx_recip",))
def attention_forward(question_input, hidden, encoder_outputs,
                      w_red_h, w_red_q, b_red, w_comb_t, b_comb,
                      approx_recip=False):
    B, H = question_input.shape
    H2 = hidden.shape[1]                          # 2 * hidden_size
    L = encoder_outputs.shape[1]                  # max_document_length
    Hp = b_red.shape[1]                           # lane-padded 2H
    compute_dtype = w_red_h.dtype                 # f32 or bf16 MXU operands

    tL = _pick_l_tile(L)
    grid = (L // tL,)

    kernel = functools.partial(attention_kernel, h2=H2,
                               compute_dtype=compute_dtype,
                               approx_recip=approx_recip)

    f32b = 4
    wb = jnp.dtype(compute_dtype).itemsize
    block_bytes = (B * H2 * f32b + B * H * f32b            # hidden, question
                   + Hp * H2 * wb + Hp * H * wb            # w_red_h, w_red_q
                   + Hp * f32b                             # b_red
                   + B * tL * H2 * f32b                    # encoder_outputs tile
                   + tL * Hp * wb                          # w_comb_t tile
                   + Hp * f32b                             # b_comb
                   + 2 * B * Hp * f32b)                    # out, attn
    vmem_limit = int(2 * block_bytes + (4 << 20))          # double-buffered + headroom

    cost = pl.CostEstimate(
        flops=int(2 * B * Hp * (H2 + H) + 2 * B * L * H2 + 2 * B * L * Hp),
        transcendentals=int(B * Hp),
        bytes_accessed=int((B * H2 + B * H + Hp * H2 + Hp * H + 2 * Hp
                            + B * L * H2 + L * Hp + 2 * B * Hp) * f32b))

    out_p, attn_p = pl.pallas_call(
        kernel,
        grid_spec=pltpu.PrefetchScalarGridSpec(
            num_scalar_prefetch=0,
            grid=grid,
            in_specs=[
                pl.BlockSpec((B, H2), lambda l: (0, 0)),          # hidden
                pl.BlockSpec((B, H), lambda l: (0, 0)),           # question
                pl.BlockSpec((Hp, H2), lambda l: (0, 0)),         # w_red_h
                pl.BlockSpec((Hp, H), lambda l: (0, 0)),          # w_red_q
                pl.BlockSpec((1, Hp), lambda l: (0, 0)),          # b_red
                pl.BlockSpec((B, tL, H2), lambda l: (0, l, 0)),   # encoder_outputs
                pl.BlockSpec((tL, Hp), lambda l: (l, 0)),         # w_comb^T
                pl.BlockSpec((1, Hp), lambda l: (0, 0)),          # b_comb
            ],
            out_specs=(
                pl.BlockSpec((B, Hp), lambda l: (0, 0)),          # output (accumulator)
                pl.BlockSpec((B, Hp), lambda l: (0, 0)),          # attn (resident)
            ),
        ),
        out_shape=(jax.ShapeDtypeStruct((B, Hp), jnp.float32),
                   jax.ShapeDtypeStruct((B, Hp), jnp.float32)),
        compiler_params=pltpu.CompilerParams(
            # L is a reduction axis for `output` (resident accumulator block).
            # TODO(synk): for v7x megacore, split L across the two TensorCores
            # with per-core partial accumulators + a final cross-core add.
            dimension_semantics=("arbitrary",),
            vmem_limit_bytes=vmem_limit,
        ),
        cost_estimate=cost,
    )(hidden, question_input, w_red_h, w_red_q, b_red,
      encoder_outputs, w_comb_t, b_comb)

    if Hp != H2:                     # padding was needed (2H not lane-aligned)
        out_p = out_p[:, :H2]
        attn_p = attn_p[:, :H2]
    return out_p, attn_p.reshape(B, H2, 1)   # PyTorch returns (B, 2H, 1)


def _reference(question_input, hidden, encoder_outputs,
               w_reduced, b_reduced, w_combined, b_combined):
    hi = jax.lax.Precision.HIGHEST
    concat = jnp.concatenate([hidden[None], question_input[None]], axis=2)  # (1,B,3H)
    reduced = jnp.matmul(concat, w_reduced.T, precision=hi) + b_reduced     # (1,B,2H)
    attn = jax.nn.softmax(reduced, axis=1)                                  # (1,B,2H)
    aw = jnp.transpose(jnp.transpose(attn, (0, 2, 1)), (2, 1, 0))           # (B,2H,1)
    applied = jnp.matmul(encoder_outputs, aw, precision=hi)                 # (B,L,1)
    out = (jnp.matmul(jnp.squeeze(applied, 2), w_combined.T, precision=hi)
           + b_combined)                                                    # (B,2H)
    return jnp.maximum(out, 0.0), aw


def _run_case(key, hidden_size, max_document_length, batch, matmul_dtype,
              approx_recip, atol, rtol, label):
    H, L, B = hidden_size, max_document_length, batch
    k = jax.random.split(key, 7)
    question_input = jax.random.normal(k[0], (B, H), jnp.float32)
    hidden = jax.random.normal(k[1], (B, 2 * H), jnp.float32)
    encoder_outputs = jax.random.normal(k[2], (B, L, 2 * H), jnp.float32)

    # nn.Linear-style deterministic init (uniform in +-1/sqrt(fan_in))
    lim_r = 1.0 / float(jnp.sqrt(3.0 * H))
    lim_c = 1.0 / float(jnp.sqrt(1.0 * L))
    w_reduced = jax.random.uniform(k[3], (2 * H, 3 * H), jnp.float32, -lim_r, lim_r)
    b_reduced = jax.random.uniform(k[4], (2 * H,), jnp.float32, -lim_r, lim_r)
    w_combined = jax.random.uniform(k[5], (2 * H, L), jnp.float32, -lim_c, lim_c)
    b_combined = jax.random.uniform(k[6], (2 * H,), jnp.float32, -lim_c, lim_c)

    # One-time parameter prep (outside the per-call path).
    params = prepare_attention_params(w_reduced, b_reduced, w_combined,
                                      b_combined, matmul_dtype=matmul_dtype)

    out, attn_w = attention_forward(question_input, hidden, encoder_outputs,
                                    params["w_red_h"], params["w_red_q"],
                                    params["b_red"], params["w_comb_t"],
                                    params["b_comb"],
                                    approx_recip=approx_recip)
    out = jax.block_until_ready(out)
    attn_w = jax.block_until_ready(attn_w)

    ref_out, ref_attn = _reference(question_input, hidden, encoder_outputs,
                                   w_reduced, b_reduced, w_combined, b_combined)
    assert out.shape == (B, 2 * H) and attn_w.shape == (B, 2 * H, 1), label
    assert jnp.allclose(out, ref_out, atol=atol, rtol=rtol), label
    assert jnp.allclose(attn_w, ref_attn, atol=atol, rtol=rtol), label


if __name__ == "__main__":
    key = jax.random.PRNGKey(0)
    k1, k2, k3 = jax.random.split(key, 3)

    # 1) Small benchmark shape, full-f32 matmuls (strict 1e-5 reference check).
    _run_case(k1, hidden_size=16, max_document_length=8, batch=4,
              matmul_dtype=jnp.float32, approx_recip=False,
              atol=1e-5, rtol=1e-5, label="f32-small")

    # 2) Same shape on the v6e/v7x fast path: bf16 MXU operands (f32 accum)
    #    + approximate EUP reciprocal; looser tolerance as advised.
    _run_case(k2, hidden_size=16, max_document_length=8, batch=4,
              matmul_dtype=jnp.bfloat16, approx_recip=True,
              atol=1e-1, rtol=1e-1, label="bf16-small")

    # 3) Larger L to exercise the L-tiled grid + resident accumulator path
    #    (tL = 512, grid = (2,)), with a pad-free 2H = 128.
    _run_case(k3, hidden_size=64, max_document_length=1024, batch=8,
              matmul_dtype=jnp.float32, approx_recip=False,
              atol=1e-4, rtol=1e-4, label="f32-tiled")

    print("KERNEL_OK")
</pallas_src>

<mosaic_0001>
module attributes {stable_mosaic.version = 11 : i64} {
  func.func @attention_kernel(%arg0: i32, %arg1: memref<4x32xf32, #tpu.memory_space<vmem>>, %arg2: memref<4x16xf32, #tpu.memory_space<vmem>>, %arg3: memref<128x32xf32, #tpu.memory_space<vmem>>, %arg4: memref<128x16xf32, #tpu.memory_space<vmem>>, %arg5: memref<1x128xf32, #tpu.memory_space<vmem>>, %arg6: memref<4x8x32xf32, #tpu.memory_space<vmem>>, %arg7: memref<8x128xf32, #tpu.memory_space<vmem>>, %arg8: memref<1x128xf32, #tpu.memory_space<vmem>>, %arg9: memref<4x128xf32, #tpu.memory_space<vmem>>, %arg10: memref<4x128xf32, #tpu.memory_space<vmem>>) attributes {dimension_semantics = [#tpu.dimension_semantics<arbitrary>], iteration_bounds = array<i64: 1>, scalar_prefetch = 0 : i64, scratch_operands = 0 : i64, tpu.core_type = #tpu.core_type<tc>, window_params = [{pipeline_mode = #tpu.pipeline_mode<synchronous>, transform_indices = @transform_0, window_bounds = array<i64: 4, 32>}, {pipeline_mode = #tpu.pipeline_mode<synchronous>, transform_indices = @transform_1, window_bounds = array<i64: 4, 16>}, {pipeline_mode = #tpu.pipeline_mode<synchronous>, transform_indices = @transform_2, window_bounds = array<i64: 128, 32>}, {pipeline_mode = #tpu.pipeline_mode<synchronous>, transform_indices = @transform_3, window_bounds = array<i64: 128, 16>}, {pipeline_mode = #tpu.pipeline_mode<synchronous>, transform_indices = @transform_4, window_bounds = array<i64: 1, 128>}, {transform_indices = @transform_5, window_bounds = array<i64: 4, 8, 32>}, {transform_indices = @transform_6, window_bounds = array<i64: 8, 128>}, {pipeline_mode = #tpu.pipeline_mode<synchronous>, transform_indices = @transform_7, window_bounds = array<i64: 1, 128>}, {pipeline_mode = #tpu.pipeline_mode<synchronous>, transform_indices = @transform_8, window_bounds = array<i64: 4, 128>}, {pipeline_mode = #tpu.pipeline_mode<synchronous>, transform_indices = @transform_9, window_bounds = array<i64: 4, 128>}]} {
    %c0_i32 = arith.constant 0 : i32
    %0 = arith.cmpi eq, %arg0, %c0_i32 : i32
    %1 = arith.extui %0 : i1 to i32
    %c0_i32_0 = arith.constant 0 : i32
    %2 = arith.cmpi ne, %1, %c0_i32_0 : i32
    scf.if %2 {
      %c0_14 = arith.constant 0 : index
      %c0_15 = arith.constant 0 : index
      %18 = vector.load %arg1[%c0_14, %c0_15] : memref<4x32xf32, #tpu.memory_space<vmem>>, vector<4x32xf32>
      %c0_16 = arith.constant 0 : index
      %c0_17 = arith.constant 0 : index
      %19 = vector.load %arg2[%c0_16, %c0_17] : memref<4x16xf32, #tpu.memory_space<vmem>>, vector<4x16xf32>
      %c0_18 = arith.constant 0 : index
      %c0_19 = arith.constant 0 : index
      %20 = vector.load %arg3[%c0_18, %c0_19] : memref<128x32xf32, #tpu.memory_space<vmem>>, vector<128x32xf32>
      %cst_20 = arith.constant dense<0.000000e+00> : vector<4x128xf32>
      %21 = tpu.matmul %18, %20, %cst_20 {dimension_numbers = #tpu.dot_dimension_numbers<[1], [1], [0], [0], [0, 0, 1, 0], [], []>} : vector<4x32xf32>, vector<128x32xf32>, vector<4x128xf32> -> vector<4x128xf32>
      %c0_21 = arith.constant 0 : index
      %c0_22 = arith.constant 0 : index
      %22 = vector.load %arg4[%c0_21, %c0_22] : memref<128x16xf32, #tpu.memory_space<vmem>>, vector<128x16xf32>
      %cst_23 = arith.constant dense<0.000000e+00> : vector<4x128xf32>
      %23 = tpu.matmul %19, %22, %cst_23 {dimension_numbers = #tpu.dot_dimension_numbers<[1], [1], [0], [0], [0, 0, 1, 0], [], []>} : vector<4x16xf32>, vector<128x16xf32>, vector<4x128xf32> -> vector<4x128xf32>
      %24 = arith.addf %21, %23 : vector<4x128xf32>
      %c0_24 = arith.constant 0 : index
      %c0_25 = arith.constant 0 : index
      %25 = vector.load %arg5[%c0_24, %c0_25] : memref<1x128xf32, #tpu.memory_space<vmem>>, vector<1x128xf32>
      %26 = vector.broadcast %25 : vector<1x128xf32> to vector<4x128xf32>
      %27 = arith.addf %24, %26 : vector<4x128xf32>
      %cst_26 = arith.constant dense<0xFF800000> : vector<128xf32>
      %28 = vector.multi_reduction <maximumf>, %27, %cst_26 [0] : vector<4x128xf32> to vector<128xf32>
      %29 = vector.shape_cast %28 : vector<128xf32> to vector<1x128xf32>
      %30 = vector.broadcast %29 : vector<1x128xf32> to vector<4x128xf32>
      %31 = arith.subf %27, %30 : vector<4x128xf32>
      %32 = math.exp %31 : vector<4x128xf32>
      %cst_27 = arith.constant dense<0.000000e+00> : vector<128xf32>
      %33 = vector.multi_reduction <add>, %32, %cst_27 [0] : vector<4x128xf32> to vector<128xf32>
      %34 = vector.shape_cast %33 : vector<128xf32> to vector<1x128xf32>
      %35 = tpu.reciprocal %34 : vector<1x128xf32> -> vector<1x128xf32>
      %36 = vector.broadcast %35 : vector<1x128xf32> to vector<4x128xf32>
      %37 = arith.mulf %32, %36 : vector<4x128xf32>
      %c0_28 = arith.constant 0 : index
      %c0_29 = arith.constant 0 : index
      %38 = vector.load %arg10[%c0_28, %c0_29] : memref<4x128xf32, #tpu.memory_space<vmem>>, vector<4x128xf32>
      tpu.vector_store %arg10[%c0_28, %c0_29], %37 {strides = array<i32>} : memref<4x128xf32, #tpu.memory_space<vmem>>, vector<4x128xf32>,
      %cst_30 = arith.constant 0.000000e+00 : f32
      %39 = vector.broadcast %cst_30 : f32 to vector<4x128xf32>
      %c0_31 = arith.constant 0 : index
      %c0_32 = arith.constant 0 : index
      %40 = vector.load %arg9[%c0_31, %c0_32] : memref<4x128xf32, #tpu.memory_space<vmem>>, vector<4x128xf32>
      tpu.vector_store %arg9[%c0_31, %c0_32], %39 {strides = array<i32>} : memref<4x128xf32, #tpu.memory_space<vmem>>, vector<4x128xf32>,
    } else {
    }
    %c0 = arith.constant 0 : index
    %c0_1 = arith.constant 0 : index
    %3 = vector.load %arg10[%c0, %c0_1] : memref<4x128xf32, #tpu.memory_space<vmem>>, vector<4x128xf32>
    %4 = vector.extract_strided_slice %3 {offsets = [0, 0], sizes = [4, 32], strides = [1, 1]} : vector<4x128xf32> to vector<4x32xf32>
    %c0_2 = arith.constant 0 : index
    %c0_3 = arith.constant 0 : index
    %c0_4 = arith.constant 0 : index
    %5 = vector.load %arg6[%c0_2, %c0_3, %c0_4] : memref<4x8x32xf32, #tpu.memory_space<vmem>>, vector<4x8x32xf32>
    %6 = vector.shape_cast %4 : vector<4x32xf32> to vector<4x1x32xf32>
    %7 = vector.broadcast %6 : vector<4x1x32xf32> to vector<4x8x32xf32>
    %8 = arith.mulf %5, %7 : vector<4x8x32xf32>
    %cst = arith.constant dense<0.000000e+00> : vector<4x8xf32>
    %9 = vector.multi_reduction <add>, %8, %cst [2] : vector<4x8x32xf32> to vector<4x8xf32>
    %c0_5 = arith.constant 0 : index
    %c0_6 = arith.constant 0 : index
    %10 = vector.load %arg9[%c0_5, %c0_6] : memref<4x128xf32, #tpu.memory_space<vmem>>, vector<4x128xf32>
    %c0_7 = arith.constant 0 : index
    %c0_8 = arith.constant 0 : index
    %11 = vector.load %arg7[%c0_7, %c0_8] : memref<8x128xf32, #tpu.memory_space<vmem>>, vector<8x128xf32>
    %cst_9 = arith.constant dense<0.000000e+00> : vector<4x128xf32>
    %12 = tpu.matmul %9, %11, %cst_9 {dimension_numbers = #tpu.dot_dimension_numbers<[1], [0], [0], [1], [0, 0, 1, 1], [], []>} : vector<4x8xf32>, vector<8x128xf32>, vector<4x128xf32> -> vector<4x128xf32>
    %13 = arith.addf %10, %12 : vector<4x128xf32>
    %c0_10 = arith.constant 0 : index
    %c0_11 = arith.constant 0 : index
    %14 = vector.load %arg9[%c0_10, %c0_11] : memref<4x128xf32, #tpu.memory_space<vmem>>, vector<4x128xf32>
    tpu.vector_store %arg9[%c0_10, %c0_11], %13 {strides = array<i32>} : memref<4x128xf32, #tpu.memory_space<vmem>>, vector<4x128xf32>,
    %c0_i32_12 = arith.constant 0 : i32
    %15 = arith.cmpi eq, %arg0, %c0_i32_12 : i32
    %16 = arith.extui %15 : i1 to i32
    %c0_i32_13 = arith.constant 0 : i32
    %17 = arith.cmpi ne, %16, %c0_i32_13 : i32
    scf.if %17 {
      %c0_14 = arith.constant 0 : index
      %c0_15 = arith.constant 0 : index
      %18 = vector.load %arg9[%c0_14, %c0_15] : memref<4x128xf32, #tpu.memory_space<vmem>>, vector<4x128xf32>
      %c0_16 = arith.constant 0 : index
      %c0_17 = arith.constant 0 : index
      %19 = vector.load %arg8[%c0_16, %c0_17] : memref<1x128xf32, #tpu.memory_space<vmem>>, vector<1x128xf32>
      %20 = vector.broadcast %19 : vector<1x128xf32> to vector<4x128xf32>
      %21 = arith.addf %18, %20 : vector<4x128xf32>
      %cst_18 = arith.constant 0.000000e+00 : f32
      %22 = vector.broadcast %cst_18 : f32 to vector<4x128xf32>
      %23 = arith.maximumf %21, %22 : vector<4x128xf32>
      %c0_19 = arith.constant 0 : index
      %c0_20 = arith.constant 0 : index
      %24 = vector.load %arg9[%c0_19, %c0_20] : memref<4x128xf32, #tpu.memory_space<vmem>>, vector<4x128xf32>
      tpu.vector_store %arg9[%c0_19, %c0_20], %23 {strides = array<i32>} : memref<4x128xf32, #tpu.memory_space<vmem>>, vector<4x128xf32>,
    } else {
    }
    return
  }
  func.func @transform_0(%arg0: i32) -> (i32, i32) {
    %c0_i32 = arith.constant 0 : i32
    %c0_i32_0 = arith.constant 0 : i32
    %c0_i32_1 = arith.constant 0 : i32
    return %c0_i32, %c0_i32_0 : i32, i32
  }
  func.func @transform_1(%arg0: i32) -> (i32, i32) {
    %c0_i32 = arith.constant 0 : i32
    %c0_i32_0 = arith.constant 0 : i32
    %c0_i32_1 = arith.constant 0 : i32
    return %c0_i32, %c0_i32_0 : i32, i32
  }
  func.func @transform_2(%arg0: i32) -> (i32, i32) {
    %c0_i32 = arith.constant 0 : i32
    %c0_i32_0 = arith.constant 0 : i32
    %c0_i32_1 = arith.constant 0 : i32
    return %c0_i32, %c0_i32_0 : i32, i32
  }
  func.func @transform_3(%arg0: i32) -> (i32, i32) {
    %c0_i32 = arith.constant 0 : i32
    %c0_i32_0 = arith.constant 0 : i32
    %c0_i32_1 = arith.constant 0 : i32
    return %c0_i32, %c0_i32_0 : i32, i32
  }
  func.func @transform_4(%arg0: i32) -> (i32, i32) {
    %c0_i32 = arith.constant 0 : i32
    %c0_i32_0 = arith.constant 0 : i32
    %c0_i32_1 = arith.constant 0 : i32
    return %c0_i32, %c0_i32_0 : i32, i32
  }
  func.func @transform_5(%arg0: i32) -> (i32, i32, i32) {
    %c0_i32 = arith.constant 0 : i32
    %c0_i32_0 = arith.constant 0 : i32
    %c0_i32_1 = arith.constant 0 : i32
    return %c0_i32, %arg0, %c0_i32_0 : i32, i32, i32
  }
  func.func @transform_6(%arg0: i32) -> (i32, i32) {
    %c0_i32 = arith.constant 0 : i32
    %c0_i32_0 = arith.constant 0 : i32
    return %arg0, %c0_i32 : i32, i32
  }
  func.func @transform_7(%arg0: i32) -> (i32, i32) {
    %c0_i32 = arith.constant 0 : i32
    %c0_i32_0 = arith.constant 0 : i32
    %c0_i32_1 = arith.constant 0 : i32
    return %c0_i32, %c0_i32_0 : i32, i32
  }
  func.func @transform_8(%arg0: i32) -> (i32, i32) {
    %c0_i32 = arith.constant 0 : i32
    %c0_i32_0 = arith.constant 0 : i32
    %c0_i32_1 = arith.constant 0 : i32
    return %c0_i32, %c0_i32_0 : i32, i32
  }
  func.func @transform_9(%arg0: i32) -> (i32, i32) {
    %c0_i32 = arith.constant 0 : i32
    %c0_i32_0 = arith.constant 0 : i32
    %c0_i32_1 = arith.constant 0 : i32
    return %c0_i32, %c0_i32_0 : i32, i32
  }
}

</mosaic_0001>

<bundles_post_ra>
// kernel: attention_forward.1
= control target key start
LH: loop header
LB: loop body
LE: loop exit
PB: predicated region body
PF: predicated region fallthrough
CT: control target
= control target key end

     0   :  { %15 = vsyncpa [#allocation3], 0  ;;  %vm71_vm0 = vcmask 130048   ;;  %vm143_vm1 = vcmask 261120   ;;  %s691_s0 = inlined_call_operand.vmem [shape: f32[4,32], index: 0, kind: input, shape index: {}]   ;;  %s692_s1 = inlined_call_operand.vmem [shape: f32[4,16], index: 1, kind: input, shape index: {}]   ;;  %s693_s2 = inlined_call_operand.vmem [shape: f32[128,32], index: 2, kind: input, shape index: {}]   ;;  %s694_s3 = inlined_call_operand.vmem [shape: f32[128,16], index: 3, kind: input, shape index: {}]   ;;  %s695_s4 = inlined_call_operand.vmem [shape: f32[1,128], index: 4, kind: input, shape index: {}]   ;;  %s696_s5 = inlined_call_operand.vmem [shape: f32[4,8,32], index: 5, kind: input, shape index: {}]   ;;  %s697_s6 = inlined_call_operand.vmem [shape: f32[8,128], index: 6, kind: input, shape index: {}]   ;;  %s698_s7 = inlined_call_operand.vmem [shape: f32[1,128], index: 7, kind: input, shape index: {}]   ;;  %s699_s8 = inlined_call_operand.hbm [shape: f32[4,128], index: 8, kind: output, shape index: {0}]   ;;  %s700_s9 = inlined_call_operand.hbm [shape: f32[4,128], index: 9, kind: output, shape index: {1}]  }
   0x1   :  { %v70_v0 = vld [vmem:[%s694_s3 + $0x78] sm:$0xff]  ;;  %v69_v2 = vld [vmem:[%s694_s3 + $0x70] sm:$0xff]  ;;  %v68_v4 = vld [vmem:[%s694_s3 + $0x68] sm:$0xff] }
   0x2   :  { %v54_v1 = vld [vmem:[%s693_s2 + $0x78] sm:$0xff]  ;;  %375 = vmatpush.xpose.msk.msra.mxu0 %vm71_vm0, %v70_v0  ;;  %v53_v3 = vld [vmem:[%s693_s2 + $0x70] sm:$0xff]  ;;  %v52_v5 = vld [vmem:[%s693_s2 + $0x68] sm:$0xff] }
   0x3   :  { %392 = vmatpush.xpose.msk.msra.mxu1 %vm143_vm1, %v54_v1 }
   0x6   :  { %376 = vmatpush.xpose.msk.msra.mxu0 %vm71_vm0, %v69_v2 }
   0x7   :  { %393 = vmatpush.xpose.msk.msra.mxu1 %vm143_vm1, %v53_v3 }
   0x8   :  { %16 = vsyncpa [#allocation5], 0  ;;  %v67_v6 = vld [vmem:[%s694_s3 + $0x60] sm:$0xff]  ;;  %v66_v8 = vld [vmem:[%s694_s3 + $0x58] sm:$0xff]  ;;  %vm220_vm2 = vcmask 1043456   ;;  %vm301_vm7 = vcmask 1041409  }
   0x9   :  { %v51_v7 = vld [vmem:[%s693_s2 + $0x60] sm:$0xff]  ;;  %v50_v9 = vld [vmem:[%s693_s2 + $0x58] sm:$0xff]  ;;  %v65_v10 = vld [vmem:[%s694_s3 + $0x50] sm:$0xff]  ;;  %vm303_vm8 = vcmask 1042434   ;;  %vm305_vm9 = vcmask 1043459   ;;  %vm307_vm10 = vcmask 64512  }
   0xa   :  { %377 = vmatpush.xpose.msk.msra.mxu0 %vm71_vm0, %v68_v4  ;;  %v49_v11 = vld [vmem:[%s693_s2 + $0x50] sm:$0xff]  ;;  %v64_v12 = vld [vmem:[%s694_s3 + $0x48] sm:$0xff]  ;;  %v63_v14 = vld [vmem:[%s694_s3 + $0x40] sm:$0xff]  ;;  %s361_s23 = sshll.u32 %s700_s9, 4  ;;  %s473_s26 = smov [#allocation2]   ;;  %s362_s23 = int_to_ptr.hbm [resolvable:$true] %s361_s23 }
   0xb   :  { %394 = vmatpush.xpose.msk.msra.mxu1 %vm143_vm1, %v52_v5  ;;  %v48_v13 = vld [vmem:[%s693_s2 + $0x48] sm:$0xff]  ;;  %v47_v15 = vld [vmem:[%s693_s2 + $0x40] sm:$0xff]  ;;  %v62_v16 = vld [vmem:[%s694_s3 + $0x38] sm:$0xff]  ;;  %s348_s27 = sshll.u32 %s473_s26, 4  ;;  %s350_s30 = sshll.u32 %s699_s8, 4  ;;  %s349_s27 = int_to_ptr.vmem [resolvable:$true] %s348_s27  ;;  %s351_s30 = int_to_ptr.hbm [resolvable:$true] %s350_s30 }
   0xc   :  { %v46_v17 = vld [vmem:[%s693_s2 + $0x38] sm:$0xff]  ;;  %v61_v18 = vld [vmem:[%s694_s3 + $0x30] sm:$0xff]  ;;  %v60_v20 = vld [vmem:[%s694_s3 + $0x28] sm:$0xff] }
   0xd   :  { %v45_v19 = vld [vmem:[%s693_s2 + $0x30] sm:$0xff]  ;;  %v44_v21 = vld [vmem:[%s693_s2 + $0x28] sm:$0xff]  ;;  %v59_v22 = vld [vmem:[%s694_s3 + $0x20] sm:$0xff] }
   0xe   :  { %378 = vmatpush.xpose.msk.msra.mxu0 %vm71_vm0, %v67_v6  ;;  %v43_v23 = vld [vmem:[%s693_s2 + $0x20] sm:$0xff]  ;;  %v58_v24 = vld [vmem:[%s694_s3 + $0x18] sm:$0xff]  ;;  %v57_v26 = vld [vmem:[%s694_s3 + $0x10] sm:$0xff] }
   0xf   :  { %395 = vmatpush.xpose.msk.msra.mxu1 %vm143_vm1, %v51_v7  ;;  %v42_v25 = vld [vmem:[%s693_s2 + $0x18] sm:$0xff]  ;;  %v41_v27 = vld [vmem:[%s693_s2 + $0x10] sm:$0xff]  ;;  %v56_v28 = vld [vmem:[%s694_s3 + $0x8] sm:$0xff] }
  0x10   :  { %v40_v29 = vld [vmem:[%s693_s2 + $0x8] sm:$0xff]  ;;  %v55_v30 = vld [vmem:[%s694_s3] sm:$0xff] }
  0x11   :  { %v39_v31 = vld [vmem:[%s693_s2] sm:$0xff] }
  0x12   :  { %379 = vmatpush.xpose.msk.msra.mxu0 %vm71_vm0, %v66_v8  ;;  %v38_v32 = vld [vmem:[%s692_s1] sm:$0xf]  ;;  %v258_v8 = vld [vmem:[%s696_s5 + $0x10] sm:$0xff] }
  0x13   :  { %396 = vmatpush.xpose.msk.msra.mxu1 %vm143_vm1, %v50_v9  ;;  %v37_v33 = vld [vmem:[%s691_s0] sm:$0xf] }
  0x14   :  { %v413_v34 = vld [vmem:[%s695_s4] ss:$0 sm:$0xff] }
  0x15   :  { %v256_v4 = vld [vmem:[%s696_s5] sm:$0xff] }
  0x16   :  { %380 = vmatpush.xpose.msk.msra.mxu0 %vm71_vm0, %v65_v10 }
  0x17   :  { %397 = vmatpush.xpose.msk.msra.mxu1 %vm143_vm1, %v49_v11 }
  0x1a   :  { %381 = vmatpush.xpose.msk.msra.mxu0 %vm71_vm0, %v64_v12 }
  0x1b   :  { %398 = vmatpush.xpose.msk.msra.mxu1 %vm143_vm1, %v48_v13 }
  0x1e   :  { %382 = vmatpush.xpose.msk.msra.mxu0 %vm71_vm0, %v63_v14 }
  0x1f   :  { %399 = vmatpush.xpose.msk.msra.mxu1 %vm143_vm1, %v47_v15  ;;  %v257_v15 = vld [vmem:[%s696_s5 + $0x8] sm:$0xff] }
  0x22   :  { %383 = vmatpush.xpose.msk.msra.mxu0 %vm71_vm0, %v62_v16 }
  0x23   :  { %400 = vmatpush.xpose.msk.msra.mxu1 %vm143_vm1, %v46_v17 }
  0x26   :  { %384 = vmatpush.xpose.msk.msra.mxu0 %vm71_vm0, %v61_v18  ;;  %v259_v18 = vld [vmem:[%s696_s5 + $0x18] sm:$0xff]  ;;  %s472_s5 = smov [#allocation4]  }
  0x27   :  { %401 = vmatpush.xpose.msk.msra.mxu1 %vm143_vm1, %v45_v19 }
  0x2a   :  { %385 = vmatpush.xpose.msk.msra.mxu0 %vm71_vm0, %v60_v20 }
  0x2b   :  { %402 = vmatpush.xpose.msk.msra.mxu1 %vm143_vm1, %v44_v21 }
  0x2e   :  { %386 = vmatpush.xpose.msk.msra.mxu0 %vm71_vm0, %v59_v22 }
  0x2f   :  { %403 = vmatpush.xpose.msk.msra.mxu1 %vm143_vm1, %v43_v23  ;;  %v290_v23 = vld [vmem:[%s697_s6] sm:$0xff]  ;;  %s359_s6 = sshll.u32 %s472_s5, 4  ;;  %s360_s6 = int_to_ptr.vmem [resolvable:$true] %s359_s6 }
  0x30   :  { %325 = vmatpush.msra.mxu2 %v290_v23 }
  0x32   :  { %387 = vmatpush.xpose.msk.msra.mxu0 %vm71_vm0, %v58_v24  ;;  %v471_v24 = vmov 0.0  }
  0x33   :  { %404 = vmatpush.xpose.msk.msra.mxu1 %vm143_vm1, %v42_v25  ;;  %254 = vst [vmem:[#allocation2] sm:$0xf] %v471_v24 }
  0x36   :  { %388 = vmatpush.xpose.msk.msra.mxu0 %vm71_vm0, %v57_v26  ;;  %v295_v26 = vlaneseq }
  0x37   :  { %405 = vmatpush.xpose.msk.msra.mxu1 %vm143_vm1, %v41_v27 }
  0x3a   :  { %389 = vmatpush.xpose.msk.msra.mxu0 %vm71_vm0, %v56_v28  ;;  %v296_v28 = vand.u32 127, %v295_v26 }
  0x3b   :  { %406 = vmatpush.xpose.msk.msra.mxu1 %vm143_vm1, %v40_v29 }
  0x3e   :  { %390 = vmatpush.xpose.msk.msra.mxu0 %vm71_vm0, %v55_v30 }
  0x3f   :  { %407 = vmatpush.xpose.msk.msra.mxu1 %vm143_vm1, %v39_v31 }
  0x41   :  { %391 = vmatmul.msk.f32.vlgmr.msra.gmra.mxu0 %vm71_vm0, %v38_v32 }
  0x42   :  { %408 = vmatmul.msk.f32.vlgmr.msra.gmra.mxu1 %vm143_vm1, %v37_v33 }
  0xbe   :  { %v140_v35 = vpop.f32.mrf.mxu0 }
  0xbf   :  { %v212_v36 = vpop.f32.mrf.mxu1 }
  0xc0   :  { %v213_v37 = vadd.f32 %v212_v36, %v140_v35 }
  0xc2   :  { %v219_v38 = vadd.f32 %v413_v34, %v213_v37 }
  0xc4   :  { %v221_v39 = vsel %vm220_vm2, %v219_v38, -inf }
  0xc5   :  { %v222_v40 = vrot.slane %v221_v39, 4 }
  0xc7   :  { %v223_v41 = vmax.f32 %v221_v39, %v222_v40 }
  0xc9   :  { %v224_v42 = vrot.slane %v223_v41, 2 }
  0xcb   :  { %v225_v43 = vmax.f32 %v223_v41, %v224_v42  ;;  %v414_v41 = vld [vmem:[%s698_s7] ss:$0 sm:$0xff] }
  0xcd   :  { %v226_v44 = vrot.slane %v225_v43, 1 }
  0xcf   :  { %v227_v45 = vmax.f32 %v225_v43, %v226_v44 }
  0xd1   :  { %v228_v46 = vsub.f32 %v219_v38, %v227_v45  ;;  %v289_v38 = vld [vmem:[#allocation2] sm:$0xf] }
  0xd3   :  { %v229_v47 = vmul.f32 1.442695, %v228_v46 }
  0xd5   :  { %415 = vpow2.f32 %v229_v47 }
  0xdb   :  { %v416_v48 = vpop.eup %415 }
  0xdc   :  { %v231_v49 = vsel %vm220_vm2, %v416_v48, 0.0 }
  0xdd   :  { %v232_v50 = vrot.slane %v231_v49, 4 }
  0xdf   :  { %v233_v51 = vadd.f32 %v232_v50, %v231_v49 }
  0xe1   :  { %v234_v52 = vrot.slane %v233_v51, 2 }
  0xe3   :  { %v235_v53 = vadd.f32 %v234_v52, %v233_v51 }
  0xe5   :  { %v236_v54 = vrot.slane %v235_v53, 1 }
  0xe7   :  { %v237_v55 = vadd.f32 %v236_v54, %v235_v53 }
  0xe9   :  { %417 = vrcp.f32 %v237_v55  ;;  %v249_v59 = vand.u32 2147483648, %v237_v55  ;;  %v247_v61 = vand.u32 2147483647, %v237_v55  ;;  %vm243_vm4 = vweird.f32 %v237_v55 }
  0xeb   :  { %v250_v63 = vor.u32 1.1754944e-38, %v249_v59  ;;  %vm248_vm6 = vcmp.eq.f32.partialorder %v247_v61, 8.507059e+37 }
  0xef   :  { %v418_v56 = vpop.eup %417 }
  0xf0   :  { %v239_v57 = vmul.f32 %v418_v56, %v237_v55  ;;  %vm244_vm3 = vweird.f32 %v418_v56 }
  0xf1   :  { %vm245_vm5 = vmor %vm243_vm4, %vm244_vm3 }
  0xf2   :  { %v240_v58 = vsub.f32 1.0, %v239_v57 }
  0xf4   :  { %v241_v60 = vmul.f32 %v418_v56, %v240_v58 }
  0xf6   :  { %v242_v62 = vadd.f32 %v418_v56, %v241_v60 }
  0xf8   :  { %v246_v0 = vsel %vm245_vm5, %v418_v56, %v242_v62 }
  0xf9   :  { %v251_v1 = vsel %vm248_vm6, %v250_v63, %v246_v0 }
  0xfa   :  { %v252_v2 = vmul.f32 %v416_v48, %v251_v1 }
  0xfc   :  { %253 = vst [vmem:[#allocation4] sm:$0xf] %v252_v2 }
  0xfd   :  { %364 = dma.vmem_to_hbm [thread:$0]  %s360_s6, 64, %s362_s23, [#allocation5]  }
 0x103   :  { %v255_v3 = vld [vmem:[#allocation4] sm:$0xf] }
 0x104   :  { %v264_v5 = vperm.slane %v255_v3, 0  ;;  %v262_v6 = vrot.slane %v255_v3, 2  ;;  %v261_v7 = vrot.slane %v255_v3, 1  ;;  %v263_v11 = vrot.slane %v255_v3, 3 }
 0x106   :  { %v272_v9 = vmul.f32 %v264_v5, %v256_v4  ;;  %v266_v10 = vperm.slane %v262_v6, 0  ;;  %v265_v14 = vperm.slane %v261_v7, 0  ;;  %v267_v17 = vperm.slane %v263_v11, 0 }
 0x108   :  { %v277_v12 = vsel %vm143_vm1, %v272_v9, 0.0  ;;  %v274_v13 = vmul.f32 %v266_v10, %v258_v8  ;;  %v273_v19 = vmul.f32 %v265_v14, %v257_v15  ;;  %v275_v20 = vmul.f32 %v267_v17, %v259_v18 }
 0x109   :  { %278 = vadd.xlane.f32.xlu0 %v277_v12 }
 0x10a   :  { %v283_v16 = vsel %vm143_vm1, %v274_v13, 0.0  ;;  %v280_v21 = vsel %vm143_vm1, %v273_v19, 0.0  ;;  %v286_v22 = vsel %vm143_vm1, %v275_v20, 0.0 }
 0x10b   :  { %284 = vadd.xlane.f32.xlu1 %v283_v16 }
 0x111   :  { %281 = vadd.xlane.f32.xlu0 %v280_v21 }
 0x113   :  { %287 = vadd.xlane.f32.xlu1 %v286_v22 }
 0x17c   :  { %v279_v25 = vpop.xlane.xlu0 %278 }
 0x17d   :  { %v297_v30 = vperm.slane %v279_v25, %v296_v28 }
 0x17e   :  { %v285_v27 = vpop.xlane.xlu1 %284 }
 0x17f   :  { %v299_v32 = vperm.slane %v285_v27, %v296_v28 }
 0x184   :  { %v282_v29 = vpop.xlane.xlu0 %281 }
 0x185   :  { %v298_v31 = vperm.slane %v282_v29, %v296_v28 }
 0x186   :  { %v288_v33 = vpop.xlane.xlu1 %287 }
 0x187   :  { %v302_v34 = vsel %vm301_vm7, %v298_v31, %v297_v30  ;;  %v300_v35 = vperm.slane %v288_v33, %v296_v28 }
 0x188   :  { %v304_v36 = vsel %vm303_vm8, %v299_v32, %v302_v34 }
 0x189   :  { %v306_v37 = vsel %vm305_vm9, %v300_v35, %v304_v36 }
 0x18a   :  { %409 = vmatmul.msk.f32.vlgmr.msra.gmra.mxu2 %vm307_vm10, %v306_v37 }
 0x20d   :  { %v327_v39 = vpop.f32.mrf.mxu2 }
 0x20e   :  { %v330_v40 = vadd.f32 %v327_v39, %v289_v38 }
 0x210   :  { %331 = vst [vmem:[#allocation2] sm:$0xf] %v330_v40 }
 0x217   :  { %v335_v42 = vld [vmem:[#allocation2] sm:$0xf] }
 0x218   :  { %v340_v43 = vadd.f32 %v414_v41, %v335_v42 }
 0x21a   :  { %v341_v44 = vmax.f32 %v340_v43, 0.0 }
 0x21c   :  { %342 = vst [vmem:[#allocation2] sm:$0xf] %v341_v44 }
 0x21d   :  { %353 = dma.vmem_to_hbm [thread:$0]  %s349_s27, 64, %s351_s30, [#allocation3]  }
 0x21e   :  { %467 = dma.done.wait [#allocation3], 64  }
 0x21f   :  { %468 = vsyncadd [#allocation3], 4294967232 }
 0x220   :  { %469 = dma.done.wait [#allocation5], 64  }
 0x221   :  { %470 = vsyncadd [#allocation5], 4294967232 }
 0x222   :  { %373 = vsyncpa [#allocation3], 1 }
 0x223   :  { %374 = vsyncpa [#allocation5], 1 }

</bundles_post_ra>
